<compile_context>
chip_gen: v6e
topology: v6e:2x2x1
jax: 0.10.0
libtpu: 0.0.40
codegen_flags: <defaults>
</compile_context>

<pallas_src>
import functools

import jax
import jax.numpy as jnp
from jax import lax
from jax.experimental import pallas as pl
from jax.experimental.pallas import tpu as pltpu


def _round_up(x, m):
    return ((x + m - 1) // m) * m


# --------------------------------------------------------------------------- #
# Hardware-aware VMEM budget (v5e/v6e: 128 MiB physical, v7x: 64 MiB).        #
# --------------------------------------------------------------------------- #
@functools.lru_cache(maxsize=1)
def _vmem_budget_bytes():
    try:
        cap = int(pltpu.get_tpu_info().vmem_capacity_bytes)
    except Exception:
        cap = 64 * 1024 * 1024  # conservative fallback
    # Keep the double-buffered working set at <= ~3/4 of physical VMEM,
    # capped at 96 MiB (v5e/v6e) -> ~48 MiB on v7x's 64 MiB VMEM.
    return min((cap * 3) // 4, 96 * 1024 * 1024)


def _select_tiles(batch_hint, d_out, d_in, itemsize):
    """Pick (tm, tn, tk): (8,128)-legal, MXU-width friendly, VMEM-budget safe."""
    budget = _vmem_budget_bytes()

    tm = min(_round_up(batch_hint, 8), 512)
    # 256-multiples for wide layers: v6e/v7x MXU is 2x256x256.
    tn = min(_round_up(d_out, 256 if d_out >= 256 else 128), 512)
    tk = min(_round_up(d_in, 256 if d_in >= 256 else 128), 2048)

    def working_set(tm_, tn_, tk_):
        # double-buffered x & w input tiles + f32 acc scratch
        # + double-buffered output tile + bias tile.
        return (2 * (tm_ * tk_ + tn_ * tk_) * itemsize
                + tm_ * tn_ * 4
                + 2 * tm_ * tn_ * itemsize
                + 2 * tn_ * 4)

    while working_set(tm, tn, tk) > budget and tk > 128:
        tk = _round_up(tk // 2, 128)
    while working_set(tm, tn, tk) > budget and tn > 128:
        tn = _round_up(tn // 2, 128)
    while working_set(tm, tn, tk) > budget and tm > 8:
        tm = _round_up(tm // 2, 8)

    # Megacore nudge (v7x): if N would otherwise be a single block, split it so
    # both TensorCores get work along the "parallel" N axis (non-trivial K only).
    if tn >= 256 and _round_up(d_out, tn) // tn == 1 and d_in >= 512:
        tn = _round_up(tn // 2, 128)

    return tm, tn, tk


# --------------------------------------------------------------------------- #
# Kernels                                                                      #
# --------------------------------------------------------------------------- #
def _linear_kernel_multi_k(x_ref, w_ref, b_ref, o_ref, acc_ref):
    # x_ref:   (tm, tk)      activation tile
    # w_ref:   (tn, tk)      weight tile in NATIVE (D_out, D_in) layout
    # b_ref:   (1,  tn)      bias tile
    # o_ref:   (tm, tn)      output tile (resident across the k axis)
    # acc_ref: (tm, tn) f32  VMEM accumulator scratch
    k = pl.program_id(2)

    @pl.when(k == 0)
    def _():
        acc_ref[...] = jnp.zeros_like(acc_ref)

    # Contract along K without transposing the weight: x (tm, tk) . w (tn, tk)^T.
    acc_ref[...] += lax.dot_general(
        x_ref[...],
        w_ref[...],
        dimension_numbers=(((1,), (1,)), ((), ())),
        preferred_element_type=jnp.float32,
    )

    @pl.when(k == pl.num_programs(2) - 1)
    def _():
        o_ref[...] = (acc_ref[...] + b_ref[...].astype(jnp.float32)).astype(o_ref.dtype)


def _linear_kernel_single_k(x_ref, w_ref, b_ref, o_ref):
    # K fits a single tile: no scratch accumulator, no pl.when branches.
    acc = lax.dot_general(
        x_ref[...],
        w_ref[...],
        dimension_numbers=(((1,), (1,)), ((), ())),
        preferred_element_type=jnp.float32,
    )
    o_ref[...] = (acc + b_ref[...].astype(jnp.float32)).astype(o_ref.dtype)


# --------------------------------------------------------------------------- #
# Pallas linear on pre-padded parameters                                       #
# --------------------------------------------------------------------------- #
def _pallas_linear(x, w_p, b_p, *, tm, tn, tk, d_out, out_dtype):
    """x: (B, D_in) unpadded; w_p: (N_pad, K_pad) native layout; b_p: (1, N_pad)."""
    B, D_in = x.shape
    N_pad, K_pad = w_p.shape
    M_pad = _round_up(B, tm)

    # Zero padding of K columns contributes 0 to the dot product; extra M rows
    # are sliced off below.  No-op when already aligned.
    if M_pad != B or K_pad != D_in:
        x_p = jnp.pad(x, ((0, M_pad - B), (0, K_pad - D_in)))
    else:
        x_p = x

    grid = (M_pad // tm, N_pad // tn, K_pad // tk)
    single_k = grid[2] == 1

    itemsize = jnp.dtype(x_p.dtype).itemsize
    cost = pl.CostEstimate(
        flops=2 * M_pad * N_pad * K_pad,
        transcendentals=0,
        bytes_accessed=(
            x_p.size * itemsize
            + w_p.size * jnp.dtype(w_p.dtype).itemsize
            + b_p.size * jnp.dtype(b_p.dtype).itemsize
            + M_pad * N_pad * jnp.dtype(out_dtype).itemsize
        ),
    )

    in_specs = [
        pl.BlockSpec((tm, tk), lambda i, j, k: (i, k)),   # activations
        pl.BlockSpec((tn, tk), lambda i, j, k: (j, k)),   # weight (D_out, D_in) layout
        pl.BlockSpec((1, tn), lambda i, j, k: (0, j)),    # bias
    ]
    out_spec = pl.BlockSpec((tm, tn), lambda i, j, k: (i, j))  # resident over k
    compiler_params = pltpu.CompilerParams(
        dimension_semantics=("parallel", "parallel", "arbitrary"),
        vmem_limit_bytes=int(_vmem_budget_bytes()),
    )

    if single_k:
        out_padded = pl.pallas_call(
            _linear_kernel_single_k,
            out_shape=jax.ShapeDtypeStruct((M_pad, N_pad), out_dtype),
            grid=grid,
            in_specs=in_specs,
            out_specs=out_spec,
            compiler_params=compiler_params,
            cost_estimate=cost,
        )(x_p, w_p, b_p)
    else:
        out_padded = pl.pallas_call(
            _linear_kernel_multi_k,
            out_shape=jax.ShapeDtypeStruct((M_pad, N_pad), out_dtype),
            grid=grid,
            in_specs=in_specs,
            out_specs=out_spec,
            scratch_shapes=[pltpu.VMEM((tm, tn), jnp.float32)],
            compiler_params=compiler_params,
            cost_estimate=cost,
        )(x_p, w_p, b_p)

    # No-op when B/D_out are aligned; fuses with the consumer under jit.
    return out_padded[:B, :d_out]


_pallas_linear_jit = jax.jit(
    _pallas_linear, static_argnames=("tm", "tn", "tk", "d_out", "out_dtype")
)


# --------------------------------------------------------------------------- #
# Module-like wrapper: parameter padding hoisted to construction              #
# --------------------------------------------------------------------------- #
class DeterministicGeneratorPallas:
    """Pallas port of the PyTorch DeterministicGenerator.

    Parameter padding (and optional bf16 cast) happens once here, so the hot
    forward path never re-pads / re-transposes the (D_out, D_in) weight.
    """

    def __init__(self, weight, bias, *, batch_hint=128, compute_dtype=None):
        d_out, d_in = weight.shape
        assert bias.shape == (d_out,), "bias shape mismatch"
        self.out_dim = int(d_out)
        self.in_dim = int(d_in)
        self.compute_dtype = compute_dtype

        if compute_dtype is not None:
            weight = weight.astype(compute_dtype)

        itemsize = jnp.dtype(weight.dtype).itemsize
        self.tm, self.tn, self.tk = _select_tiles(batch_hint, d_out, d_in, itemsize)

        n_pad = _round_up(d_out, self.tn)
        k_pad = _round_up(d_in, self.tk)
        # Padded once, native layout (no transpose).
        self.w_p = jnp.pad(weight, ((0, n_pad - d_out), (0, k_pad - d_in)))
        self.b_p = jnp.pad(bias.astype(jnp.float32), (0, n_pad - d_out)).reshape(1, n_pad)

    def get_output_dim(self):
        return self.out_dim

    def __call__(self, x):
        out_dtype = x.dtype
        if self.compute_dtype is not None:
            x = x.astype(self.compute_dtype)
        tm = min(self.tm, _round_up(x.shape[0], 8))
        z = _pallas_linear_jit(
            x, self.w_p, self.b_p,
            tm=tm, tn=self.tn, tk=self.tk,
            d_out=self.out_dim, out_dtype=out_dtype,
        )
        return z, {"mean": None, "logstd": None}


# --------------------------------------------------------------------------- #
# Functional convenience wrapper with a small-problem fast path               #
# --------------------------------------------------------------------------- #
_SMALL_PROBLEM_FLOPS = 1 << 24  # ~16 MFLOP: below this, launch/pad glue dominates.


def deterministic_generator_forward(x, weight, bias, *, force_pallas=False):
    """One-shot functional forward matching the PyTorch module.

    For repeated calls with fixed parameters, build DeterministicGeneratorPallas
    once instead (parameter padding is then hoisted out of the hot path).
    """
    B, d_in = x.shape
    d_out = weight.shape[0]
    if (not force_pallas) and 2 * B * d_in * d_out < _SMALL_PROBLEM_FLOPS:
        # Tiny problem: plain XLA beats the pallas_call launch + pad/slice glue.
        z = jnp.dot(x, weight.T) + bias
        return z, {"mean": None, "logstd": None}
    gen = DeterministicGeneratorPallas(weight, bias, batch_hint=B)
    return gen(x)


if __name__ == "__main__":
    # Small shapes consistent with the module: batch=8, input_dim=32, output_dim=16.
    B, input_dim, output_dim = 8, 32, 16

    key = jax.random.PRNGKey(0)
    kx, kw, kb = jax.random.split(key, 3)

    x = jax.random.normal(kx, (B, input_dim), dtype=jnp.float32)
    # Deterministic parameter init (synthetic; mimics nn.Linear param shapes).
    weight = jax.random.normal(kw, (output_dim, input_dim), dtype=jnp.float32) * 0.1
    bias = jax.random.normal(kb, (output_dim,), dtype=jnp.float32) * 0.1

    # Exercise the Pallas kernel path (class API: padding hoisted to init).
    gen = DeterministicGeneratorPallas(weight, bias, batch_hint=B)
    z, dist_info = gen(x)
    z = jax.block_until_ready(z)

    z_ref = x @ weight.T + bias
    assert z.shape == (B, output_dim)
    assert gen.get_output_dim() == output_dim
    assert dist_info == {"mean": None, "logstd": None}
    assert jnp.allclose(z, z_ref, atol=1e-5, rtol=1e-5)

    # Also exercise the functional wrapper (small-problem fast path).
    z2, info2 = deterministic_generator_forward(x, weight, bias)
    z2 = jax.block_until_ready(z2)
    assert jnp.allclose(z2, z_ref, atol=1e-5, rtol=1e-5)
    assert info2 == {"mean": None, "logstd": None}

    print("KERNEL_OK")
</pallas_src>

<mosaic_0001>
module attributes {stable_mosaic.version = 11 : i64} {
  func.func @_linear_kernel_single_k(%arg0: i32, %arg1: i32, %arg2: i32, %arg3: memref<8x128xf32, #tpu.memory_space<vmem>>, %arg4: memref<128x128xf32, #tpu.memory_space<vmem>>, %arg5: memref<1x128xf32, #tpu.memory_space<vmem>>, %arg6: memref<8x128xf32, #tpu.memory_space<vmem>>) attributes {dimension_semantics = [#tpu.dimension_semantics<parallel>, #tpu.dimension_semantics<parallel>, #tpu.dimension_semantics<arbitrary>], iteration_bounds = array<i64: 1, 1, 1>, scalar_prefetch = 0 : i64, scratch_operands = 0 : i64, tpu.core_type = #tpu.core_type<tc>, window_params = [{transform_indices = @transform_0, window_bounds = array<i64: 8, 128>}, {transform_indices = @transform_1, window_bounds = array<i64: 128, 128>}, {transform_indices = @transform_2, window_bounds = array<i64: 1, 128>}, {transform_indices = @transform_3, window_bounds = array<i64: 8, 128>}]} {
    %c0 = arith.constant 0 : index
    %c0_0 = arith.constant 0 : index
    %0 = vector.load %arg3[%c0, %c0_0] : memref<8x128xf32, #tpu.memory_space<vmem>>, vector<8x128xf32>
    %c0_1 = arith.constant 0 : index
    %c0_2 = arith.constant 0 : index
    %1 = vector.load %arg4[%c0_1, %c0_2] : memref<128x128xf32, #tpu.memory_space<vmem>>, vector<128x128xf32>
    %cst = arith.constant dense<0.000000e+00> : vector<8x128xf32>
    %2 = tpu.matmul %0, %1, %cst {dimension_numbers = #tpu.dot_dimension_numbers<[1], [1], [0], [0], [0, 0, 1, 0], [], []>} : vector<8x128xf32>, vector<128x128xf32>, vector<8x128xf32> -> vector<8x128xf32>
    %c0_3 = arith.constant 0 : index
    %c0_4 = arith.constant 0 : index
    %3 = vector.load %arg5[%c0_3, %c0_4] : memref<1x128xf32, #tpu.memory_space<vmem>>, vector<1x128xf32>
    %4 = vector.broadcast %3 : vector<1x128xf32> to vector<8x128xf32>
    %5 = arith.addf %2, %4 : vector<8x128xf32>
    %c0_5 = arith.constant 0 : index
    %c0_6 = arith.constant 0 : index
    %6 = vector.load %arg6[%c0_5, %c0_6] : memref<8x128xf32, #tpu.memory_space<vmem>>, vector<8x128xf32>
    tpu.vector_store %arg6[%c0_5, %c0_6], %5 {strides = array<i32>} : memref<8x128xf32, #tpu.memory_space<vmem>>, vector<8x128xf32>,
    return
  }
  func.func @transform_0(%arg0: i32, %arg1: i32, %arg2: i32) -> (i32, i32) {
    %c0_i32 = arith.constant 0 : i32
    return %arg0, %arg2 : i32, i32
  }
  func.func @transform_1(%arg0: i32, %arg1: i32, %arg2: i32) -> (i32, i32) {
    %c0_i32 = arith.constant 0 : i32
    return %arg1, %arg2 : i32, i32
  }
  func.func @transform_2(%arg0: i32, %arg1: i32, %arg2: i32) -> (i32, i32) {
    %c0_i32 = arith.constant 0 : i32
    %c0_i32_0 = arith.constant 0 : i32
    return %c0_i32, %arg1 : i32, i32
  }
  func.func @transform_3(%arg0: i32, %arg1: i32, %arg2: i32) -> (i32, i32) {
    %c0_i32 = arith.constant 0 : i32
    return %arg0, %arg1 : i32, i32
  }
}

</mosaic_0001>

<bundles_post_ra>
// kernel: _pallas_linear.1
= control target key start
LH: loop header
LB: loop body
LE: loop exit
PB: predicated region body
PF: predicated region fallthrough
CT: control target
= control target key end

     0   :  { %8 = vsyncpa [#allocation3], 0  ;;  %s280_s0 = inlined_call_operand.vmem [shape: f32[8,128], index: 0, kind: input, shape index: {}]   ;;  %s281_s1 = inlined_call_operand.hbm [shape: f32[128,128], index: 1, kind: input, shape index: {}]   ;;  %s282_s2 = inlined_call_operand.vmem [shape: f32[1,128], index: 2, kind: input, shape index: {}]   ;;  %s283_s3 = inlined_call_operand.hbm [shape: f32[8,128], index: 3, kind: output, shape index: {}]  }
   0x1   :  { %9 = vsyncpa [#allocation4], 0  ;;  %s242_s12 = smov [#allocation2]  }
   0x2   :  { %s17_s13 = sshll.u32 %s242_s12, 4  ;;  %s18_s13 = int_to_ptr.vmem [resolvable:$true] %s17_s13 }
   0x3   :  { %s206_s14 = scalar_lea.vmem %s18_s13, 2048  ;;  %p211_p1 = scmp.lt.s32.totalorder %s18_s13, %s18_s13 }
   0x4   :  { %p207_p0 = scmp.ne.s32.totalorder %s18_s13, %s206_s14  ;;  %p212_p2 = scmp.lt.s32.totalorder %s206_s14, %s206_s14 }
   0x6   :  { %p213_p3 = por %p212_p2, %p211_p1 }
   0x8   :  { %p214_p4 = pnand %p213_p3, %p207_p0 }
   0xa   :  { %217 = shalt.err (!%p214_p4)
}
   0xb   :  { %s243_s15 = smov 128   ;;  %s244_s16 = smov 8  }
   0xc   :  { %23 = dma.hbm_to_vmem [thread:$0]  %s281_s1, 2048, %s18_s13, [#allocation3], %s243_s15, %s243_s15, %s244_s16  }
   0xd   :  { %238 = dma.done.wait [#allocation3], 2048  }
   0xe   :  { %239 = vsyncadd [#allocation3], 4294965248  ;;  %v245_v0 = vmov 0.0   ;;  %vm246_vm0 = vmmov 0   ;;  %v45_v1 = vld [vmem:[#allocation2 + $0x78] sm:$0xff]  ;;  %v44_v2 = vld [vmem:[#allocation2 + $0x70] sm:$0xff] }
   0xf   :  { %157 = vmatprep.subr.mxu0 %v245_v0  ;;  %189 = vmatprep.mubr.msk.f32.mxu0 %vm246_vm0, %v245_v0  ;;  %v43_v3 = vld [vmem:[#allocation2 + $0x68] sm:$0xff]  ;;  %v42_v4 = vld [vmem:[#allocation2 + $0x60] sm:$0xff]  ;;  %v41_v5 = vld [vmem:[#allocation2 + $0x58] sm:$0xff]  ;;  %s247_s22 = smov [#allocation5]  }
  0x10   :  { %158 = vmatpush3.xpose.msra.mxu0 %v45_v1  ;;  %v40_v6 = vld [vmem:[#allocation2 + $0x50] sm:$0xff]  ;;  %v39_v7 = vld [vmem:[#allocation2 + $0x48] sm:$0xff]  ;;  %v38_v8 = vld [vmem:[#allocation2 + $0x40] sm:$0xff]  ;;  %s130_s23 = sshll.u32 %s247_s22, 4  ;;  %s131_s23 = int_to_ptr.vmem [resolvable:$true] %s130_s23 }
  0x11   :  { %159 = vmatprep.subr.mxu0 %v245_v0  ;;  %v37_v9 = vld [vmem:[#allocation2 + $0x38] sm:$0xff]  ;;  %v36_v10 = vld [vmem:[#allocation2 + $0x30] sm:$0xff]  ;;  %v35_v11 = vld [vmem:[#allocation2 + $0x28] sm:$0xff]  ;;  %s218_s24 = scalar_lea.vmem %s131_s23, 128  ;;  %p223_p6 = scmp.lt.s32.totalorder %s131_s23, %s131_s23 }
  0x12   :  { %v34_v12 = vld [vmem:[#allocation2 + $0x20] sm:$0xff]  ;;  %v33_v13 = vld [vmem:[#allocation2 + $0x18] sm:$0xff]  ;;  %v32_v14 = vld [vmem:[#allocation2 + $0x10] sm:$0xff]  ;;  %p219_p5 = scmp.ne.s32.totalorder %s131_s23, %s218_s24  ;;  %p224_p7 = scmp.lt.s32.totalorder %s218_s24, %s218_s24 }
  0x13   :  { %v31_v15 = vld [vmem:[#allocation2 + $0x8] sm:$0xff]  ;;  %v30_v16 = vld [vmem:[#allocation2] sm:$0xff] }
  0x14   :  { %160 = vmatpush3.xpose.msra.mxu0 %v44_v2  ;;  %v29_v17 = vld [vmem:[%s280_s0] sm:$0xff]  ;;  %p225_p8 = por %p224_p7, %p223_p6 }
  0x15   :  { %161 = vmatprep.subr.mxu0 %v245_v0  ;;  %v139_v18 = vld [vmem:[%s282_s2] ss:$0 sm:$0xff] }
  0x16   :  { %p226_p9 = pnand %p225_p8, %p219_p5 }
  0x18   :  { %162 = vmatpush3.xpose.msra.mxu0 %v43_v3 }
  0x19   :  { %163 = vmatprep.subr.mxu0 %v245_v0 }
  0x1c   :  { %164 = vmatpush3.xpose.msra.mxu0 %v42_v4 }
  0x1d   :  { %165 = vmatprep.subr.mxu0 %v245_v0 }
  0x20   :  { %166 = vmatpush3.xpose.msra.mxu0 %v41_v5 }
  0x21   :  { %167 = vmatprep.subr.mxu0 %v245_v0 }
  0x24   :  { %168 = vmatpush3.xpose.msra.mxu0 %v40_v6 }
  0x25   :  { %169 = vmatprep.subr.mxu0 %v245_v0 }
  0x28   :  { %170 = vmatpush3.xpose.msra.mxu0 %v39_v7 }
  0x29   :  { %171 = vmatprep.subr.mxu0 %v245_v0 }
  0x2c   :  { %172 = vmatpush3.xpose.msra.mxu0 %v38_v8 }
  0x2d   :  { %173 = vmatprep.subr.mxu0 %v245_v0 }
  0x30   :  { %174 = vmatpush3.xpose.msra.mxu0 %v37_v9 }
  0x31   :  { %175 = vmatprep.subr.mxu0 %v245_v0 }
  0x34   :  { %176 = vmatpush3.xpose.msra.mxu0 %v36_v10 }
  0x35   :  { %177 = vmatprep.subr.mxu0 %v245_v0 }
  0x38   :  { %178 = vmatpush3.xpose.msra.mxu0 %v35_v11 }
  0x39   :  { %179 = vmatprep.subr.mxu0 %v245_v0 }
  0x3c   :  { %180 = vmatpush3.xpose.msra.mxu0 %v34_v12 }
  0x3d   :  { %181 = vmatprep.subr.mxu0 %v245_v0 }
  0x40   :  { %182 = vmatpush3.xpose.msra.mxu0 %v33_v13 }
  0x41   :  { %183 = vmatprep.subr.mxu0 %v245_v0 }
  0x44   :  { %184 = vmatpush3.xpose.msra.mxu0 %v32_v14 }
  0x45   :  { %185 = vmatprep.subr.mxu0 %v245_v0 }
  0x48   :  { %186 = vmatpush3.xpose.msra.mxu0 %v31_v15 }
  0x49   :  { %187 = vmatprep.subr.mxu0 %v245_v0 }
  0x4c   :  { %188 = vmatpush3.xpose.msra.mxu0 %v30_v16 }
  0x4f   :  { %190 = vmatmul.mubr.f32.vlgmr.msra.gmra.mxu0 %v29_v17 }
 0x10f   :  { %v119_v19 = vpop.f32.mrf.mxu0 }
 0x110   :  { %v120_v20 = vadd.f32 %v139_v18, %v119_v19 }
 0x111   :  { %v191_v21 = vpop.f32.mrf.mxu0 }
 0x112   :  { %123 = vst [vmem:[#allocation5] sm:$0xff] %v120_v20 }
 0x113   :  { %229 = shalt.err (!%p226_p9)
}
 0x114   :  { %133 = dma.vmem_to_hbm [thread:$0]  %s131_s23, 128, %s283_s3, [#allocation4]  }
 0x115   :  { %240 = dma.done.wait [#allocation4], 128  }
 0x116   :  { %241 = vsyncadd [#allocation4], 4294967168 }
 0x117   :  { %137 = vsyncpa [#allocation3], 1 }
 0x118   :  { %138 = vsyncpa [#allocation4], 1 }

</bundles_post_ra>
